<compile_context>
chip_gen: v5e
topology: v5e:2x2
jax: 0.10.0
libtpu: 0.0.40
codegen_flags: <defaults>
</compile_context>

<pallas_src>
import functools

import jax
import jax.numpy as jnp
from jax.experimental import pallas as pl
from jax.experimental.pallas import tpu as pltpu


def _round_up(x, m):
    return ((x + m - 1) // m) * m


def _round_down(x, m):
    return (x // m) * m


# ---------------------------------------------------------------------------
# Kernel
# ---------------------------------------------------------------------------
def _gating_kernel(x_ref, w_ref, idx_ref, gates_ref, *, top_k: int):
    """x_ref: [TB, D], w_ref: [E, D] (same dtype). Outputs: [top_k, TB]."""
    # logits_t = W @ x.T -> [E, TB]: batch on lanes, experts on sublanes.
    logits = jax.lax.dot_general(
        w_ref[...], x_ref[...],
        dimension_numbers=(((1,), (1,)), ((), ())),
        preferred_element_type=jnp.float32,
    )  # [E, TB] f32

    e, tb = logits.shape
    # Hoisted once and reused every top-k iteration.
    row_ids = jax.lax.broadcasted_iota(jnp.int32, (e, tb), 0)
    neg_inf = float("-inf")

    # Iterative top-k over the expert (sublane) axis; k is small and static.
    # Already-selected experts are excluded via an explicit boolean mask so
    # tie-breaking matches jax.lax.top_k even if a real logit equals the
    # masking sentinel.
    selected = jnp.zeros((e, tb), dtype=jnp.bool_)
    m0 = None
    ex_rows = []
    denom = jnp.zeros((1, tb), dtype=jnp.float32)
    for slot in range(top_k):
        masked = jnp.where(selected, neg_inf, logits)
        m = jnp.max(masked, axis=0, keepdims=True)                  # [1, TB]
        # lowest index among the not-yet-selected maxima (lax.top_k tie-break)
        is_max = jnp.logical_and(masked == m, jnp.logical_not(selected))
        idx = jnp.min(jnp.where(is_max, row_ids, e), axis=0, keepdims=True)
        selected = jnp.logical_or(selected, row_ids == idx)

        idx_ref[pl.ds(slot, 1), :] = idx                            # int32 row

        if slot == 0:
            m0 = m                                                  # global max of the k
            ex = jnp.ones((1, tb), dtype=jnp.float32)               # exp(0)
        else:
            ex = jnp.exp(m - m0)                                    # values descend
        ex_rows.append(ex)
        denom = denom + ex

    # approx=True would move the divide to the EUP but can violate tight
    # accuracy tolerances; the kernel is HBM-bound so this is noise-level.
    inv_denom = pl.reciprocal(denom, approx=False)
    for slot in range(top_k):
        gates_ref[pl.ds(slot, 1), :] = (
            ex_rows[slot] * inv_denom).astype(gates_ref.dtype)


# ---------------------------------------------------------------------------
# Per-generation tuning & tile selection
# ---------------------------------------------------------------------------
def _tpu_config():
    """Per-generation DMA/VMEM knobs (conservative, safe defaults)."""
    kind = ""
    try:
        kind = jax.devices()[0].device_kind.lower()
    except Exception:
        pass
    if "v7" in kind or "7x" in kind:
        # 64 MiB VMEM per TensorCore, 2 TCs/chip: leave compiler headroom and
        # guarantee the parallel grid splits across both cores.
        return dict(vmem_budget=40 << 20, vmem_limit=56 << 20,
                    min_grid_steps=2, x_buffers=2, target_x_bytes=3 << 20)
    if "v6" in kind:
        # 128 MiB physical VMEM, 1 TC.
        return dict(vmem_budget=96 << 20, vmem_limit=100 << 20,
                    min_grid_steps=1, x_buffers=2, target_x_bytes=4 << 20)
    if "v5" in kind and ("lite" in kind or "5e" in kind):
        # 128 MiB VMEM, lowest HBM BW: deeper x buffering keeps DMAs back-to-back.
        return dict(vmem_budget=96 << 20, vmem_limit=100 << 20,
                    min_grid_steps=1, x_buffers=3, target_x_bytes=3 << 20)
    # Unknown / other (v4, v5p, interpreter, ...): limits safe on every
    # generation; assume 2 cores so small batches still split.
    return dict(vmem_budget=40 << 20, vmem_limit=56 << 20,
                min_grid_steps=2, x_buffers=2, target_x_bytes=3 << 20)


def _vmem_estimate(tb, D, E, top_k, itemsize, x_buffers, w_buffers):
    e_pad = max(E, 8)
    x_bytes = x_buffers * tb * D * itemsize           # streamed x tiles
    w_bytes = w_buffers * E * D * itemsize            # resident weight
    out_bytes = 2 * top_k * tb * (4 + itemsize)       # idx(i32)+gates, dbl-buffered
    work_bytes = 6 * e_pad * tb * 4                   # f32 logits / mask / temps
    return x_bytes + w_bytes + out_bytes + work_bytes


def _choose_tile(B, D, E, top_k, itemsize, cfg, tile_b):
    padded_b128 = _round_up(B, 128)
    if tile_b is None:
        # Bytes-per-step target for the streamed x tile: amortizes the
        # ~0.35 us/grid-step pipeline overhead of this HBM-bandwidth-bound
        # kernel (AI ~ 2*E/itemsize flops/byte).
        tb = _round_up(max(1, cfg["target_x_bytes"] // max(1, D * itemsize)), 128)
    else:
        tb = _round_up(tile_b, 128)
    tb = min(tb, padded_b128)
    # Dual-TensorCore chips: make sure the "parallel" grid has >= 2 steps.
    if cfg["min_grid_steps"] > 1:
        cap = _round_down(padded_b128 // cfg["min_grid_steps"], 128)
        if cap >= 128:
            tb = min(tb, cap)
    tb = max(tb, 128)
    # Shrink in 128-multiples until the double-buffered footprint fits.
    while tb > 128 and _vmem_estimate(
            tb, D, E, top_k, itemsize, 2, 2) > cfg["vmem_budget"]:
        tb = max(128, _round_down(tb // 2, 128))
    # Deeper x buffering only if it still fits the budget.
    x_buffers = cfg["x_buffers"]
    if x_buffers > 2 and _vmem_estimate(
            tb, D, E, top_k, itemsize, x_buffers, 2) > cfg["vmem_budget"]:
        x_buffers = 2
    return tb, x_buffers


@functools.lru_cache(maxsize=1)
def _supports_pipeline_mode():
    if not hasattr(pl, "Buffered"):
        return False
    try:
        pl.BlockSpec((8, 128), lambda i: (i, 0), pipeline_mode=pl.Buffered(2))
    except Exception:
        return False
    return True


# ---------------------------------------------------------------------------
# pallas_call builder + public wrapper
# ---------------------------------------------------------------------------
def _build_call(*, top_k, tb, D, E, padded_B, out_dtype, vmem_limit,
                x_buffers, use_pipeline_mode):
    kernel = functools.partial(_gating_kernel, top_k=top_k)
    x_map = lambda i: (i, 0)
    w_map = lambda i: (0, 0)
    o_map = lambda i: (0, i)
    if use_pipeline_mode:
        # Streamed x tile: configurable buffering depth (3-deep on v5e).
        # Resident weight: constant index_map, fetched once -> one buffer.
        x_spec = pl.BlockSpec((tb, D), x_map, pipeline_mode=pl.Buffered(x_buffers))
        w_spec = pl.BlockSpec((E, D), w_map, pipeline_mode=pl.Buffered(1))
    else:
        x_spec = pl.BlockSpec((tb, D), x_map)
        w_spec = pl.BlockSpec((E, D), w_map)

    grid_spec = pltpu.PrefetchScalarGridSpec(
        num_scalar_prefetch=0,
        grid=(padded_B // tb,),
        in_specs=[x_spec, w_spec],
        out_specs=[
            pl.BlockSpec((top_k, tb), o_map),     # indices, lane-dense
            pl.BlockSpec((top_k, tb), o_map),     # gates, lane-dense
        ],
    )
    out_shapes = (
        jax.ShapeDtypeStruct((top_k, padded_B), jnp.int32),
        jax.ShapeDtypeStruct((top_k, padded_B), out_dtype),
    )
    return pl.pallas_call(
        kernel,
        grid_spec=grid_spec,
        out_shape=out_shapes,
        compiler_params=pltpu.CompilerParams(
            dimension_semantics=("parallel",),    # shards batch across TCs on v7x
            vmem_limit_bytes=vmem_limit,
        ),
    )


def top_k_gating_forward(x, weight, top_k, *, tile_b=None,
                         transposed_outputs=False,
                         vmem_budget_bytes=None, vmem_limit_bytes=None):
    """x: [B, D], weight: [E, D] (nn.Linear layout).

    Returns (indices, gates) shaped [B, top_k]; with transposed_outputs=True
    the kernel-native [top_k, B] layout is returned (columns past B are the
    caller's to ignore -- they are sliced off here), skipping the extra HBM
    round-trip of the final transpose for dispatchers that can consume it.
    """
    B, D = x.shape
    E, D2 = weight.shape
    assert D == D2
    assert top_k <= E

    # Keep the matmul in the input dtype (bf16-in / f32-acc fast MXU path);
    # this matches an nn.Linear whose parameters live in the activation dtype.
    # TODO(synk): if production keeps f32 master weights with bf16 activations
    # and near-tie routing must match f32 exactly, cast x up instead.
    if weight.dtype != x.dtype:
        weight = weight.astype(x.dtype)

    cfg = _tpu_config()
    if vmem_budget_bytes is not None:
        cfg["vmem_budget"] = vmem_budget_bytes
    if vmem_limit_bytes is not None:
        cfg["vmem_limit"] = vmem_limit_bytes

    itemsize = jnp.dtype(x.dtype).itemsize
    tb, x_buffers = _choose_tile(B, D, E, top_k, itemsize, cfg, tile_b)

    padded_B = _round_up(B, tb)
    if padded_B != B:
        x = jnp.pad(x, ((0, padded_B - B), (0, 0)))   # zero rows sliced off below

    common = dict(top_k=top_k, tb=tb, D=D, E=E, padded_B=padded_B,
                  out_dtype=x.dtype, vmem_limit=cfg["vmem_limit"],
                  x_buffers=x_buffers)

    result = None
    if _supports_pipeline_mode():
        try:
            result = _build_call(use_pipeline_mode=True, **common)(x, weight)
        except Exception:
            # Experimental pipeline_mode knob rejected by this JAX/Mosaic
            # build: fall back to the default double-buffered pipeline.
            result = None
    if result is None:
        result = _build_call(use_pipeline_mode=False, **common)(x, weight)
    idx_t, gates_t = result

    if transposed_outputs:
        return idx_t[:, :B], gates_t[:, :B]
    # Cheap final layout fix in plain XLA: [top_k, padded_B] -> [B, top_k].
    return jnp.transpose(idx_t)[:B], jnp.transpose(gates_t)[:B]


# ---------------------------------------------------------------------------
# Reference + self-test
# ---------------------------------------------------------------------------
def _reference(x, weight, top_k):
    logits = jnp.dot(x.astype(jnp.float32), weight.astype(jnp.float32).T)
    vals, idxs = jax.lax.top_k(logits, top_k)
    gates = jax.nn.softmax(vals, axis=1).astype(x.dtype)
    return idxs.astype(jnp.int32), gates


if __name__ == "__main__":
    # Small shapes consistent with the module: [batch, input_size] -> gating.
    batch, input_size, num_experts, top_k = 16, 32, 8, 2

    key = jax.random.PRNGKey(0)
    kx, kw = jax.random.split(key)
    x = jax.random.normal(kx, (batch, input_size), dtype=jnp.float32)
    # deterministic "nn.Linear(input_size, num_experts, bias=False)" weight
    bound = 1.0 / (input_size ** 0.5)
    weight = jax.random.uniform(
        kw, (num_experts, input_size), dtype=jnp.float32,
        minval=-bound, maxval=bound)

    idx, gates = top_k_gating_forward(x, weight, top_k)
    jax.block_until_ready((idx, gates))

    ref_idx, ref_gates = _reference(x, weight, top_k)
    assert idx.shape == (batch, top_k) and gates.shape == (batch, top_k)
    assert bool(jnp.all(idx == ref_idx))
    assert bool(jnp.allclose(gates, ref_gates, atol=1e-5, rtol=1e-5))

    # Kernel-native layout path (for dispatchers that consume [top_k, B]).
    idx_t, gates_t = top_k_gating_forward(x, weight, top_k,
                                          transposed_outputs=True)
    jax.block_until_ready((idx_t, gates_t))
    assert bool(jnp.all(jnp.transpose(idx_t) == ref_idx))
    assert bool(jnp.allclose(jnp.transpose(gates_t), ref_gates,
                             atol=1e-5, rtol=1e-5))

    # TODO(synk): training-time aux loss (compute_aux_loss / self.loss) and the
    # LRC_LOG_PATH env-driven logits file dump are side-effecting / training-
    # only and are not part of the inference forward implemented here.
    print("KERNEL_OK")
</pallas_src>

<mosaic_0001>
module attributes {stable_mosaic.version = 11 : i64} {
  func.func @_gating_kernel(%arg0: i32, %arg1: memref<128x32xf32, #tpu.memory_space<vmem>>, %arg2: memref<8x32xf32, #tpu.memory_space<vmem>>, %arg3: memref<2x128xi32, #tpu.memory_space<vmem>>, %arg4: memref<2x128xf32, #tpu.memory_space<vmem>>) attributes {dimension_semantics = [#tpu.dimension_semantics<parallel>], iteration_bounds = array<i64: 1>, scalar_prefetch = 0 : i64, scratch_operands = 0 : i64, tpu.core_type = #tpu.core_type<tc>, window_params = [{pipeline_mode = #tpu.pipeline_mode<double_buffered>, transform_indices = @transform_0, window_bounds = array<i64: 128, 32>}, {pipeline_mode = #tpu.pipeline_mode<synchronous>, transform_indices = @transform_1, window_bounds = array<i64: 8, 32>}, {transform_indices = @transform_2, window_bounds = array<i64: 2, 128>}, {transform_indices = @transform_3, window_bounds = array<i64: 2, 128>}]} {
    %c0 = arith.constant 0 : index
    %c0_0 = arith.constant 0 : index
    %0 = vector.load %arg2[%c0, %c0_0] : memref<8x32xf32, #tpu.memory_space<vmem>>, vector<8x32xf32>
    %c0_1 = arith.constant 0 : index
    %c0_2 = arith.constant 0 : index
    %1 = vector.load %arg1[%c0_1, %c0_2] : memref<128x32xf32, #tpu.memory_space<vmem>>, vector<128x32xf32>
    %cst = arith.constant dense<0.000000e+00> : vector<8x128xf32>
    %2 = tpu.matmul %0, %1, %cst {dimension_numbers = #tpu.dot_dimension_numbers<[1], [1], [0], [0], [0, 0, 1, 0], [], []>} : vector<8x32xf32>, vector<128x32xf32>, vector<8x128xf32> -> vector<8x128xf32>
    %3 = tpu.iota {dimensions = array<i32: 0>} : vector<8x128xi32>
    %false = arith.constant false
    %4 = vector.broadcast %false : i1 to vector<8x128xi1>
    %cst_3 = arith.constant 0.000000e+00 : f32
    %5 = vector.broadcast %cst_3 : f32 to vector<1x128xf32>
    %cst_4 = arith.constant 0xFF800000 : f32
    %6 = vector.broadcast %cst_4 : f32 to vector<8x128xf32>
    %7 = arith.select %4, %6, %2 : vector<8x128xi1>, vector<8x128xf32>
    %cst_5 = arith.constant dense<0xFF800000> : vector<128xf32>
    %8 = vector.multi_reduction <maximumf>, %7, %cst_5 [0] : vector<8x128xf32> to vector<128xf32>
    %9 = vector.shape_cast %8 : vector<128xf32> to vector<1x128xf32>
    %10 = vector.broadcast %9 : vector<1x128xf32> to vector<8x128xf32>
    %11 = arith.cmpf oeq, %7, %10 : vector<8x128xf32>
    %cst_6 = arith.constant dense<true> : vector<8x128xi1>
    %12 = arith.xori %4, %cst_6 : vector<8x128xi1>
    %13 = arith.andi %11, %12 : vector<8x128xi1>
    %c8_i32 = arith.constant 8 : i32
    %14 = vector.broadcast %c8_i32 : i32 to vector<8x128xi32>
    %15 = arith.select %13, %3, %14 : vector<8x128xi1>, vector<8x128xi32>
    %cst_7 = arith.constant dense<2147483647> : vector<128xi32>
    %16 = vector.multi_reduction <minsi>, %15, %cst_7 [0] : vector<8x128xi32> to vector<128xi32>
    %17 = vector.shape_cast %16 : vector<128xi32> to vector<1x128xi32>
    %18 = vector.broadcast %17 : vector<1x128xi32> to vector<8x128xi32>
    %19 = arith.cmpi eq, %3, %18 : vector<8x128xi32>
    %20 = arith.ori %4, %19 : vector<8x128xi1>
    %c0_8 = arith.constant 0 : index
    %c0_9 = arith.constant 0 : index
    %21 = vector.load %arg3[%c0_8, %c0_9] : memref<2x128xi32, #tpu.memory_space<vmem>>, vector<1x128xi32>
    tpu.vector_store %arg3[%c0_8, %c0_9], %17 {strides = array<i32>} : memref<2x128xi32, #tpu.memory_space<vmem>>, vector<1x128xi32>,
    %cst_10 = arith.constant 1.000000e+00 : f32
    %22 = vector.broadcast %cst_10 : f32 to vector<1x128xf32>
    %23 = arith.addf %5, %22 : vector<1x128xf32>
    %cst_11 = arith.constant 0xFF800000 : f32
    %24 = vector.broadcast %cst_11 : f32 to vector<8x128xf32>
    %25 = arith.select %20, %24, %2 : vector<8x128xi1>, vector<8x128xf32>
    %cst_12 = arith.constant dense<0xFF800000> : vector<128xf32>
    %26 = vector.multi_reduction <maximumf>, %25, %cst_12 [0] : vector<8x128xf32> to vector<128xf32>
    %27 = vector.shape_cast %26 : vector<128xf32> to vector<1x128xf32>
    %28 = vector.broadcast %27 : vector<1x128xf32> to vector<8x128xf32>
    %29 = arith.cmpf oeq, %25, %28 : vector<8x128xf32>
    %cst_13 = arith.constant dense<true> : vector<8x128xi1>
    %30 = arith.xori %20, %cst_13 : vector<8x128xi1>
    %31 = arith.andi %29, %30 : vector<8x128xi1>
    %c8_i32_14 = arith.constant 8 : i32
    %32 = vector.broadcast %c8_i32_14 : i32 to vector<8x128xi32>
    %33 = arith.select %31, %3, %32 : vector<8x128xi1>, vector<8x128xi32>
    %cst_15 = arith.constant dense<2147483647> : vector<128xi32>
    %34 = vector.multi_reduction <minsi>, %33, %cst_15 [0] : vector<8x128xi32> to vector<128xi32>
    %35 = vector.shape_cast %34 : vector<128xi32> to vector<1x128xi32>
    %c1 = arith.constant 1 : index
    %c0_16 = arith.constant 0 : index
    %36 = vector.load %arg3[%c1, %c0_16] : memref<2x128xi32, #tpu.memory_space<vmem>>, vector<1x128xi32>
    tpu.vector_store %arg3[%c1, %c0_16], %35 {strides = array<i32>} : memref<2x128xi32, #tpu.memory_space<vmem>>, vector<1x128xi32>,
    %37 = arith.subf %27, %9 : vector<1x128xf32>
    %38 = math.exp %37 : vector<1x128xf32>
    %39 = arith.addf %23, %38 : vector<1x128xf32>
    %40 = tpu.reciprocal %39 : vector<1x128xf32> -> vector<1x128xf32>
    %41 = arith.mulf %22, %40 : vector<1x128xf32>
    %c0_17 = arith.constant 0 : index
    %c0_18 = arith.constant 0 : index
    %42 = vector.load %arg4[%c0_17, %c0_18] : memref<2x128xf32, #tpu.memory_space<vmem>>, vector<1x128xf32>
    tpu.vector_store %arg4[%c0_17, %c0_18], %41 {strides = array<i32>} : memref<2x128xf32, #tpu.memory_space<vmem>>, vector<1x128xf32>,
    %43 = arith.mulf %38, %40 : vector<1x128xf32>
    %c1_19 = arith.constant 1 : index
    %c0_20 = arith.constant 0 : index
    %44 = vector.load %arg4[%c1_19, %c0_20] : memref<2x128xf32, #tpu.memory_space<vmem>>, vector<1x128xf32>
    tpu.vector_store %arg4[%c1_19, %c0_20], %43 {strides = array<i32>} : memref<2x128xf32, #tpu.memory_space<vmem>>, vector<1x128xf32>,
    return
  }
  func.func @transform_0(%arg0: i32) -> (i32, i32) {
    %c0_i32 = arith.constant 0 : i32
    %c0_i32_0 = arith.constant 0 : i32
    return %arg0, %c0_i32 : i32, i32
  }
  func.func @transform_1(%arg0: i32) -> (i32, i32) {
    %c0_i32 = arith.constant 0 : i32
    %c0_i32_0 = arith.constant 0 : i32
    %c0_i32_1 = arith.constant 0 : i32
    return %c0_i32, %c0_i32_0 : i32, i32
  }
  func.func @transform_2(%arg0: i32) -> (i32, i32) {
    %c0_i32 = arith.constant 0 : i32
    %c0_i32_0 = arith.constant 0 : i32
    return %c0_i32, %arg0 : i32, i32
  }
  func.func @transform_3(%arg0: i32) -> (i32, i32) {
    %c0_i32 = arith.constant 0 : i32
    %c0_i32_0 = arith.constant 0 : i32
    return %c0_i32, %arg0 : i32, i32
  }
}

module attributes {stable_mosaic.version = 11 : i64} {
  func.func @_gating_kernel(%arg0: i32, %arg1: memref<128x32xf32, #tpu.memory_space<vmem>>, %arg2: memref<8x32xf32, #tpu.memory_space<vmem>>, %arg3: memref<2x128xi32, #tpu.memory_space<vmem>>, %arg4: memref<2x128xf32, #tpu.memory_space<vmem>>) attributes {dimension_semantics = [#tpu.dimension_semantics<parallel>], iteration_bounds = array<i64: 1>, scalar_prefetch = 0 : i64, scratch_operands = 0 : i64, tpu.core_type = #tpu.core_type<tc>, window_params = [{transform_indices = @transform_0, window_bounds = array<i64: 128, 32>}, {pipeline_mode = #tpu.pipeline_mode<synchronous>, transform_indices = @transform_1, window_bounds = array<i64: 8, 32>}, {transform_indices = @transform_2, window_bounds = array<i64: 2, 128>}, {transform_indices = @transform_3, window_bounds = array<i64: 2, 128>}]} {
    %c0 = arith.constant 0 : index
    %c0_0 = arith.constant 0 : index
    %0 = vector.load %arg2[%c0, %c0_0] : memref<8x32xf32, #tpu.memory_space<vmem>>, vector<8x32xf32>
    %c0_1 = arith.constant 0 : index
    %c0_2 = arith.constant 0 : index
    %1 = vector.load %arg1[%c0_1, %c0_2] : memref<128x32xf32, #tpu.memory_space<vmem>>, vector<128x32xf32>
    %cst = arith.constant dense<0.000000e+00> : vector<8x128xf32>
    %2 = tpu.matmul %0, %1, %cst {dimension_numbers = #tpu.dot_dimension_numbers<[1], [1], [0], [0], [0, 0, 1, 0], [], []>} : vector<8x32xf32>, vector<128x32xf32>, vector<8x128xf32> -> vector<8x128xf32>
    %3 = tpu.iota {dimensions = array<i32: 0>} : vector<8x128xi32>
    %false = arith.constant false
    %4 = vector.broadcast %false : i1 to vector<8x128xi1>
    %cst_3 = arith.constant 0.000000e+00 : f32
    %5 = vector.broadcast %cst_3 : f32 to vector<1x128xf32>
    %cst_4 = arith.constant 0xFF800000 : f32
    %6 = vector.broadcast %cst_4 : f32 to vector<8x128xf32>
    %7 = arith.select %4, %6, %2 : vector<8x128xi1>, vector<8x128xf32>
    %cst_5 = arith.constant dense<0xFF800000> : vector<128xf32>
    %8 = vector.multi_reduction <maximumf>, %7, %cst_5 [0] : vector<8x128xf32> to vector<128xf32>
    %9 = vector.shape_cast %8 : vector<128xf32> to vector<1x128xf32>
    %10 = vector.broadcast %9 : vector<1x128xf32> to vector<8x128xf32>
    %11 = arith.cmpf oeq, %7, %10 : vector<8x128xf32>
    %cst_6 = arith.constant dense<true> : vector<8x128xi1>
    %12 = arith.xori %4, %cst_6 : vector<8x128xi1>
    %13 = arith.andi %11, %12 : vector<8x128xi1>
    %c8_i32 = arith.constant 8 : i32
    %14 = vector.broadcast %c8_i32 : i32 to vector<8x128xi32>
    %15 = arith.select %13, %3, %14 : vector<8x128xi1>, vector<8x128xi32>
    %cst_7 = arith.constant dense<2147483647> : vector<128xi32>
    %16 = vector.multi_reduction <minsi>, %15, %cst_7 [0] : vector<8x128xi32> to vector<128xi32>
    %17 = vector.shape_cast %16 : vector<128xi32> to vector<1x128xi32>
    %18 = vector.broadcast %17 : vector<1x128xi32> to vector<8x128xi32>
    %19 = arith.cmpi eq, %3, %18 : vector<8x128xi32>
    %20 = arith.ori %4, %19 : vector<8x128xi1>
    %c0_8 = arith.constant 0 : index
    %c0_9 = arith.constant 0 : index
    %21 = vector.load %arg3[%c0_8, %c0_9] : memref<2x128xi32, #tpu.memory_space<vmem>>, vector<1x128xi32>
    tpu.vector_store %arg3[%c0_8, %c0_9], %17 {strides = array<i32>} : memref<2x128xi32, #tpu.memory_space<vmem>>, vector<1x128xi32>,
    %cst_10 = arith.constant 1.000000e+00 : f32
    %22 = vector.broadcast %cst_10 : f32 to vector<1x128xf32>
    %23 = arith.addf %5, %22 : vector<1x128xf32>
    %cst_11 = arith.constant 0xFF800000 : f32
    %24 = vector.broadcast %cst_11 : f32 to vector<8x128xf32>
    %25 = arith.select %20, %24, %2 : vector<8x128xi1>, vector<8x128xf32>
    %cst_12 = arith.constant dense<0xFF800000> : vector<128xf32>
    %26 = vector.multi_reduction <maximumf>, %25, %cst_12 [0] : vector<8x128xf32> to vector<128xf32>
    %27 = vector.shape_cast %26 : vector<128xf32> to vector<1x128xf32>
    %28 = vector.broadcast %27 : vector<1x128xf32> to vector<8x128xf32>
    %29 = arith.cmpf oeq, %25, %28 : vector<8x128xf32>
    %cst_13 = arith.constant dense<true> : vector<8x128xi1>
    %30 = arith.xori %20, %cst_13 : vector<8x128xi1>
    %31 = arith.andi %29, %30 : vector<8x128xi1>
    %c8_i32_14 = arith.constant 8 : i32
    %32 = vector.broadcast %c8_i32_14 : i32 to vector<8x128xi32>
    %33 = arith.select %31, %3, %32 : vector<8x128xi1>, vector<8x128xi32>
    %cst_15 = arith.constant dense<2147483647> : vector<128xi32>
    %34 = vector.multi_reduction <minsi>, %33, %cst_15 [0] : vector<8x128xi32> to vector<128xi32>
    %35 = vector.shape_cast %34 : vector<128xi32> to vector<1x128xi32>
    %c1 = arith.constant 1 : index
    %c0_16 = arith.constant 0 : index
    %36 = vector.load %arg3[%c1, %c0_16] : memref<2x128xi32, #tpu.memory_space<vmem>>, vector<1x128xi32>
    tpu.vector_store %arg3[%c1, %c0_16], %35 {strides = array<i32>} : memref<2x128xi32, #tpu.memory_space<vmem>>, vector<1x128xi32>,
    %37 = arith.subf %27, %9 : vector<1x128xf32>
    %38 = math.exp %37 : vector<1x128xf32>
    %39 = arith.addf %23, %38 : vector<1x128xf32>
    %40 = tpu.reciprocal %39 : vector<1x128xf32> -> vector<1x128xf32>
    %41 = arith.mulf %22, %40 : vector<1x128xf32>
    %c0_17 = arith.constant 0 : index
    %c0_18 = arith.constant 0 : index
    %42 = vector.load %arg4[%c0_17, %c0_18] : memref<2x128xf32, #tpu.memory_space<vmem>>, vector<1x128xf32>
    tpu.vector_store %arg4[%c0_17, %c0_18], %41 {strides = array<i32>} : memref<2x128xf32, #tpu.memory_space<vmem>>, vector<1x128xf32>,
    %43 = arith.mulf %38, %40 : vector<1x128xf32>
    %c1_19 = arith.constant 1 : index
    %c0_20 = arith.constant 0 : index
    %44 = vector.load %arg4[%c1_19, %c0_20] : memref<2x128xf32, #tpu.memory_space<vmem>>, vector<1x128xf32>
    tpu.vector_store %arg4[%c1_19, %c0_20], %43 {strides = array<i32>} : memref<2x128xf32, #tpu.memory_space<vmem>>, vector<1x128xf32>,
    return
  }
  func.func @transform_0(%arg0: i32) -> (i32, i32) {
    %c0_i32 = arith.constant 0 : i32
    %c0_i32_0 = arith.constant 0 : i32
    return %arg0, %c0_i32 : i32, i32
  }
  func.func @transform_1(%arg0: i32) -> (i32, i32) {
    %c0_i32 = arith.constant 0 : i32
    %c0_i32_0 = arith.constant 0 : i32
    %c0_i32_1 = arith.constant 0 : i32
    return %c0_i32, %c0_i32_0 : i32, i32
  }
  func.func @transform_2(%arg0: i32) -> (i32, i32) {
    %c0_i32 = arith.constant 0 : i32
    %c0_i32_0 = arith.constant 0 : i32
    return %c0_i32, %arg0 : i32, i32
  }
  func.func @transform_3(%arg0: i32) -> (i32, i32) {
    %c0_i32 = arith.constant 0 : i32
    %c0_i32_0 = arith.constant 0 : i32
    return %c0_i32, %arg0 : i32, i32
  }
}

</mosaic_0001>

<bundles_post_ra>
// kernel: tpu_custom_call.1
= control target key start
LH: loop header
LB: loop body
LE: loop exit
PB: predicated region body
PF: predicated region fallthrough
CT: control target
= control target key end

     0   :  { %9 = vsyncpa [#allocation3], 0  ;;  %vm32_vm0 = vcmask 261120   ;;  %s372_s0 = inlined_call_operand.vmem [shape: f32[128,32], index: 0, kind: input, shape index: {}]   ;;  %s373_s1 = inlined_call_operand.vmem [shape: f32[8,32], index: 1, kind: input, shape index: {}]   ;;  %s374_s2 = inlined_call_operand.hbm [shape: s32[2,128], index: 2, kind: output, shape index: {0}]   ;;  %s375_s3 = inlined_call_operand.hbm [shape: f32[2,128], index: 3, kind: output, shape index: {1}]  }
   0x1   :  { %v31_v0 = vld [vmem:[%s372_s0 + $0x78] sm:$0xff]  ;;  %v30_v1 = vld [vmem:[%s372_s0 + $0x70] sm:$0xff] }
   0x2   :  { %199 = vmatpush.xpose.msk.msra.mxu0 %vm32_vm0, %v31_v0 }
   0x3   :  { %10 = vsyncpa [#allocation5], 0  ;;  %v29_v2 = vld [vmem:[%s372_s0 + $0x68] sm:$0xff]  ;;  %v28_v3 = vld [vmem:[%s372_s0 + $0x60] sm:$0xff]  ;;  %v104_v21 = vlaneseq  ;;  %vm275_vm7 = vmmov 1   ;;  %s174_s21 = sshll.u32 %s374_s2, 4  ;;  %s175_s21 = int_to_ptr.hbm [resolvable:$true] %s174_s21 }
   0x4   :  { %v27_v4 = vld [vmem:[%s372_s0 + $0x58] sm:$0xff]  ;;  %v26_v5 = vld [vmem:[%s372_s0 + $0x50] sm:$0xff]  ;;  %v25_v6 = vld [vmem:[%s372_s0 + $0x48] sm:$0xff]  ;;  %s277_s2 = smov [#allocation4]   ;;  %s185_s25 = sshll.u32 %s375_s3, 4  ;;  %s186_s25 = int_to_ptr.hbm [resolvable:$true] %s185_s25 }
   0x5   :  { %v24_v7 = vld [vmem:[%s372_s0 + $0x40] sm:$0xff]  ;;  %v23_v8 = vld [vmem:[%s372_s0 + $0x38] sm:$0xff]  ;;  %v22_v9 = vld [vmem:[%s372_s0 + $0x30] sm:$0xff]  ;;  %v105_v24 = vshrl.u32 %v104_v21, 7  ;;  %s183_s22 = sshll.u32 %s277_s2, 4  ;;  %s184_s22 = int_to_ptr.vmem [resolvable:$true] %s183_s22 }
   0x6   :  { %200 = vmatpush.xpose.msk.msra.mxu0 %vm32_vm0, %v30_v1  ;;  %v21_v10 = vld [vmem:[%s372_s0 + $0x28] sm:$0xff]  ;;  %v20_v11 = vld [vmem:[%s372_s0 + $0x20] sm:$0xff]  ;;  %v19_v12 = vld [vmem:[%s372_s0 + $0x18] sm:$0xff] }
   0x7   :  { %v18_v13 = vld [vmem:[%s372_s0 + $0x10] sm:$0xff]  ;;  %v17_v14 = vld [vmem:[%s372_s0 + $0x8] sm:$0xff]  ;;  %v16_v15 = vld [vmem:[%s372_s0] sm:$0xff]  ;;  %s276_s0 = smov [#allocation2]  }
   0x8   :  { %v15_v16 = vld [vmem:[%s373_s1] sm:$0xff]  ;;  %s172_s1 = sshll.u32 %s276_s0, 4  ;;  %s173_s1 = int_to_ptr.vmem [resolvable:$true] %s172_s1 }
   0xa   :  { %201 = vmatpush.xpose.msk.msra.mxu0 %vm32_vm0, %v29_v2 }
   0xe   :  { %202 = vmatpush.xpose.msk.msra.mxu0 %vm32_vm0, %v28_v3 }
  0x12   :  { %203 = vmatpush.xpose.msk.msra.mxu0 %vm32_vm0, %v27_v4 }
  0x16   :  { %204 = vmatpush.xpose.msk.msra.mxu0 %vm32_vm0, %v26_v5 }
  0x1a   :  { %205 = vmatpush.xpose.msk.msra.mxu0 %vm32_vm0, %v25_v6 }
  0x1e   :  { %206 = vmatpush.xpose.msk.msra.mxu0 %vm32_vm0, %v24_v7 }
  0x22   :  { %207 = vmatpush.xpose.msk.msra.mxu0 %vm32_vm0, %v23_v8 }
  0x26   :  { %208 = vmatpush.xpose.msk.msra.mxu0 %vm32_vm0, %v22_v9 }
  0x2a   :  { %209 = vmatpush.xpose.msk.msra.mxu0 %vm32_vm0, %v21_v10 }
  0x2e   :  { %210 = vmatpush.xpose.msk.msra.mxu0 %vm32_vm0, %v20_v11 }
  0x32   :  { %211 = vmatpush.xpose.msk.msra.mxu0 %vm32_vm0, %v19_v12 }
  0x36   :  { %212 = vmatpush.xpose.msk.msra.mxu0 %vm32_vm0, %v18_v13 }
  0x3a   :  { %213 = vmatpush.xpose.msk.msra.mxu0 %vm32_vm0, %v17_v14 }
  0x3e   :  { %214 = vmatpush.xpose.msk.msra.mxu0 %vm32_vm0, %v16_v15 }
  0x41   :  { %215 = vmatmul.msk.f32.vlgmr.msra.gmra.mxu0 %vm32_vm0, %v15_v16 }
  0xbe   :  { %v101_v17 = vpop.f32.mrf.mxu0 }
  0xbf   :  { %v106_v18 = vrot.slane %v101_v17, 4 }
  0xc1   :  { %v107_v19 = vmax.f32 %v101_v17, %v106_v18 }
  0xc3   :  { %v108_v20 = vrot.slane %v107_v19, 2 }
  0xc5   :  { %v109_v22 = vmax.f32 %v107_v19, %v108_v20 }
  0xc7   :  { %v110_v23 = vrot.slane %v109_v22, 1 }
  0xc9   :  { %v111_v25 = vmax.f32 %v109_v22, %v110_v23 }
  0xcb   :  { %vm112_vm1 = vcmp.eq.f32.partialorder %v101_v17, %v111_v25 }
  0xcc   :  { %v113_v26 = vsel %vm112_vm1, %v105_v24, 8 }
  0xcd   :  { %v114_v27 = vrot.slane %v113_v26, 4 }
  0xcf   :  { %vm115_vm2 = vcmp.lt.s32.totalorder %v113_v26, %v114_v27 }
  0xd0   :  { %v116_v28 = vsel %vm115_vm2, %v113_v26, %v114_v27 }
  0xd1   :  { %v117_v29 = vrot.slane %v116_v28, 2 }
  0xd3   :  { %vm118_vm3 = vcmp.lt.s32.totalorder %v116_v28, %v117_v29 }
  0xd4   :  { %v119_v30 = vsel %vm118_vm3, %v116_v28, %v117_v29 }
  0xd5   :  { %v120_v31 = vrot.slane %v119_v30, 1 }
  0xd7   :  { %vm121_vm4 = vcmp.lt.s32.totalorder %v119_v30, %v120_v31 }
  0xd8   :  { %v122_v32 = vsel %vm121_vm4, %v119_v30, %v120_v31 }
  0xd9   :  { %vm123_vm5 = vcmp.eq.s32.totalorder %v105_v24, %v122_v32  ;;  %124 = vst [vmem:[#allocation2] sm:$0x1] %v122_v32 }
  0xda   :  { %v125_v33 = vsel %vm123_vm5, -inf, %v101_v17  ;;  %vm133_vm8 = vmxor %vm123_vm5, %vm275_vm7 }
  0xdb   :  { %v126_v34 = vrot.slane %v125_v33, 4 }
  0xdd   :  { %v127_v35 = vmax.f32 %v125_v33, %v126_v34 }
  0xdf   :  { %v128_v36 = vrot.slane %v127_v35, 2 }
  0xe1   :  { %v129_v37 = vmax.f32 %v127_v35, %v128_v36 }
  0xe3   :  { %v130_v38 = vrot.slane %v129_v37, 1 }
  0xe5   :  { %v131_v39 = vmax.f32 %v129_v37, %v130_v38 }
  0xe7   :  { %vm132_vm6 = vcmp.eq.f32.partialorder %v125_v33, %v131_v39  ;;  %v146_v40 = vsub.f32 %v131_v39, %v111_v25 }
  0xe8   :  { %vm134_vm9 = vmand %vm132_vm6, %vm133_vm8 }
  0xe9   :  { %v135_v41 = vsel %vm134_vm9, %v105_v24, 8  ;;  %v147_v42 = vmul.f32 1.442695, %v146_v40 }
  0xea   :  { %v136_v43 = vrot.slane %v135_v41, 4 }
  0xeb   :  { %219 = vpow2.f32 %v147_v42 }
  0xec   :  { %vm137_vm10 = vcmp.lt.s32.totalorder %v135_v41, %v136_v43 }
  0xed   :  { %v138_v44 = vsel %vm137_vm10, %v135_v41, %v136_v43 }
  0xee   :  { %v139_v45 = vrot.slane %v138_v44, 2 }
  0xf0   :  { %vm140_vm11 = vcmp.lt.s32.totalorder %v138_v44, %v139_v45 }
  0xf1   :  { %v220_v46 = vpop.eup %219  ;;  %v141_v47 = vsel %vm140_vm11, %v138_v44, %v139_v45 }
  0xf2   :  { %v149_v48 = vadd.f32 1.0, %v220_v46  ;;  %v142_v49 = vrot.slane %v141_v47, 1 }
  0xf4   :  { %221 = vrcp.f32 %v149_v48  ;;  %vm143_vm12 = vcmp.lt.s32.totalorder %v141_v47, %v142_v49  ;;  %v161_v54 = vand.u32 2147483648, %v149_v48  ;;  %v159_v56 = vand.u32 2147483647, %v149_v48 }
  0xf5   :  { %v144_v50 = vsel %vm143_vm12, %v141_v47, %v142_v49  ;;  %vm155_vm14 = vweird.f32 %v149_v48 }
  0xf6   :  { %145 = vst [vmem:[#allocation2 + $0x1] sm:$0x1] %v144_v50  ;;  %v162_v58 = vor.u32 1.1754944e-38, %v161_v54  ;;  %vm160_vm0 = vcmp.eq.f32.partialorder %v159_v56, 8.507059e+37 }
  0xf7   :  { %177 = dma.vmem_to_hbm [thread:$0]  %s173_s1, 32, %s175_s21, [#allocation3]  }
  0xfa   :  { %v222_v51 = vpop.eup %221 }
  0xfb   :  { %v151_v52 = vmul.f32 %v222_v51, %v149_v48  ;;  %vm156_vm13 = vweird.f32 %v222_v51 }
  0xfc   :  { %vm157_vm15 = vmor %vm155_vm14, %vm156_vm13 }
  0xfd   :  { %v152_v53 = vsub.f32 1.0, %v151_v52 }
  0xff   :  { %v153_v55 = vmul.f32 %v222_v51, %v152_v53 }
 0x101   :  { %v154_v57 = vadd.f32 %v222_v51, %v153_v55 }
 0x103   :  { %v158_v59 = vsel %vm157_vm15, %v222_v51, %v154_v57 }
 0x104   :  { %v163_v60 = vsel %vm160_vm0, %v162_v58, %v158_v59 }
 0x105   :  { %164 = vst [vmem:[#allocation4] sm:$0x1] %v163_v60  ;;  %v165_v61 = vmul.f32 %v220_v46, %v163_v60 }
 0x107   :  { %166 = vst [vmem:[#allocation4 + $0x1] sm:$0x1] %v165_v61 }
 0x108   :  { %188 = dma.vmem_to_hbm [thread:$0]  %s184_s22, 32, %s186_s25, [#allocation5]  }
 0x109   :  { %271 = dma.done.wait [#allocation3], 32  }
 0x10a   :  { %272 = vsyncadd [#allocation3], 4294967264 }
 0x10b   :  { %273 = dma.done.wait [#allocation5], 32  }
 0x10c   :  { %274 = vsyncadd [#allocation5], 4294967264 }
 0x10d   :  { %197 = vsyncpa [#allocation3], 1 }
 0x10e   :  { %198 = vsyncpa [#allocation5], 1 }

// kernel: tpu_custom_call.1
= control target key start
LH: loop header
LB: loop body
LE: loop exit
PB: predicated region body
PF: predicated region fallthrough
CT: control target
= control target key end

     0   :  { %9 = vsyncpa [#allocation3], 0  ;;  %vm32_vm0 = vcmask 261120   ;;  %s372_s0 = inlined_call_operand.vmem [shape: f32[128,32], index: 0, kind: input, shape index: {}]   ;;  %s373_s1 = inlined_call_operand.vmem [shape: f32[8,32], index: 1, kind: input, shape index: {}]   ;;  %s374_s2 = inlined_call_operand.hbm [shape: s32[2,128], index: 2, kind: output, shape index: {0}]   ;;  %s375_s3 = inlined_call_operand.hbm [shape: f32[2,128], index: 3, kind: output, shape index: {1}]  }
   0x1   :  { %v31_v0 = vld [vmem:[%s372_s0 + $0x78] sm:$0xff]  ;;  %v30_v1 = vld [vmem:[%s372_s0 + $0x70] sm:$0xff] }
   0x2   :  { %199 = vmatpush.xpose.msk.msra.mxu0 %vm32_vm0, %v31_v0 }
   0x3   :  { %10 = vsyncpa [#allocation5], 0  ;;  %v29_v2 = vld [vmem:[%s372_s0 + $0x68] sm:$0xff]  ;;  %v28_v3 = vld [vmem:[%s372_s0 + $0x60] sm:$0xff]  ;;  %v104_v21 = vlaneseq  ;;  %vm275_vm7 = vmmov 1   ;;  %s174_s21 = sshll.u32 %s374_s2, 4  ;;  %s175_s21 = int_to_ptr.hbm [resolvable:$true] %s174_s21 }
   0x4   :  { %v27_v4 = vld [vmem:[%s372_s0 + $0x58] sm:$0xff]  ;;  %v26_v5 = vld [vmem:[%s372_s0 + $0x50] sm:$0xff]  ;;  %v25_v6 = vld [vmem:[%s372_s0 + $0x48] sm:$0xff]  ;;  %s277_s2 = smov [#allocation4]   ;;  %s185_s25 = sshll.u32 %s375_s3, 4  ;;  %s186_s25 = int_to_ptr.hbm [resolvable:$true] %s185_s25 }
   0x5   :  { %v24_v7 = vld [vmem:[%s372_s0 + $0x40] sm:$0xff]  ;;  %v23_v8 = vld [vmem:[%s372_s0 + $0x38] sm:$0xff]  ;;  %v22_v9 = vld [vmem:[%s372_s0 + $0x30] sm:$0xff]  ;;  %v105_v24 = vshrl.u32 %v104_v21, 7  ;;  %s183_s22 = sshll.u32 %s277_s2, 4  ;;  %s184_s22 = int_to_ptr.vmem [resolvable:$true] %s183_s22 }
   0x6   :  { %200 = vmatpush.xpose.msk.msra.mxu0 %vm32_vm0, %v30_v1  ;;  %v21_v10 = vld [vmem:[%s372_s0 + $0x28] sm:$0xff]  ;;  %v20_v11 = vld [vmem:[%s372_s0 + $0x20] sm:$0xff]  ;;  %v19_v12 = vld [vmem:[%s372_s0 + $0x18] sm:$0xff] }
   0x7   :  { %v18_v13 = vld [vmem:[%s372_s0 + $0x10] sm:$0xff]  ;;  %v17_v14 = vld [vmem:[%s372_s0 + $0x8] sm:$0xff]  ;;  %v16_v15 = vld [vmem:[%s372_s0] sm:$0xff]  ;;  %s276_s0 = smov [#allocation2]  }
   0x8   :  { %v15_v16 = vld [vmem:[%s373_s1] sm:$0xff]  ;;  %s172_s1 = sshll.u32 %s276_s0, 4  ;;  %s173_s1 = int_to_ptr.vmem [resolvable:$true] %s172_s1 }
   0xa   :  { %201 = vmatpush.xpose.msk.msra.mxu0 %vm32_vm0, %v29_v2 }
   0xe   :  { %202 = vmatpush.xpose.msk.msra.mxu0 %vm32_vm0, %v28_v3 }
  0x12   :  { %203 = vmatpush.xpose.msk.msra.mxu0 %vm32_vm0, %v27_v4 }
  0x16   :  { %204 = vmatpush.xpose.msk.msra.mxu0 %vm32_vm0, %v26_v5 }
  0x1a   :  { %205 = vmatpush.xpose.msk.msra.mxu0 %vm32_vm0, %v25_v6 }
  0x1e   :  { %206 = vmatpush.xpose.msk.msra.mxu0 %vm32_vm0, %v24_v7 }
  0x22   :  { %207 = vmatpush.xpose.msk.msra.mxu0 %vm32_vm0, %v23_v8 }
  0x26   :  { %208 = vmatpush.xpose.msk.msra.mxu0 %vm32_vm0, %v22_v9 }
  0x2a   :  { %209 = vmatpush.xpose.msk.msra.mxu0 %vm32_vm0, %v21_v10 }
  0x2e   :  { %210 = vmatpush.xpose.msk.msra.mxu0 %vm32_vm0, %v20_v11 }
  0x32   :  { %211 = vmatpush.xpose.msk.msra.mxu0 %vm32_vm0, %v19_v12 }
  0x36   :  { %212 = vmatpush.xpose.msk.msra.mxu0 %vm32_vm0, %v18_v13 }
  0x3a   :  { %213 = vmatpush.xpose.msk.msra.mxu0 %vm32_vm0, %v17_v14 }
  0x3e   :  { %214 = vmatpush.xpose.msk.msra.mxu0 %vm32_vm0, %v16_v15 }
  0x41   :  { %215 = vmatmul.msk.f32.vlgmr.msra.gmra.mxu0 %vm32_vm0, %v15_v16 }
  0xbe   :  { %v101_v17 = vpop.f32.mrf.mxu0 }
  0xbf   :  { %v106_v18 = vrot.slane %v101_v17, 4 }
  0xc1   :  { %v107_v19 = vmax.f32 %v101_v17, %v106_v18 }
  0xc3   :  { %v108_v20 = vrot.slane %v107_v19, 2 }
  0xc5   :  { %v109_v22 = vmax.f32 %v107_v19, %v108_v20 }
  0xc7   :  { %v110_v23 = vrot.slane %v109_v22, 1 }
  0xc9   :  { %v111_v25 = vmax.f32 %v109_v22, %v110_v23 }
  0xcb   :  { %vm112_vm1 = vcmp.eq.f32.partialorder %v101_v17, %v111_v25 }
  0xcc   :  { %v113_v26 = vsel %vm112_vm1, %v105_v24, 8 }
  0xcd   :  { %v114_v27 = vrot.slane %v113_v26, 4 }
  0xcf   :  { %vm115_vm2 = vcmp.lt.s32.totalorder %v113_v26, %v114_v27 }
  0xd0   :  { %v116_v28 = vsel %vm115_vm2, %v113_v26, %v114_v27 }
  0xd1   :  { %v117_v29 = vrot.slane %v116_v28, 2 }
  0xd3   :  { %vm118_vm3 = vcmp.lt.s32.totalorder %v116_v28, %v117_v29 }
  0xd4   :  { %v119_v30 = vsel %vm118_vm3, %v116_v28, %v117_v29 }
  0xd5   :  { %v120_v31 = vrot.slane %v119_v30, 1 }
  0xd7   :  { %vm121_vm4 = vcmp.lt.s32.totalorder %v119_v30, %v120_v31 }
  0xd8   :  { %v122_v32 = vsel %vm121_vm4, %v119_v30, %v120_v31 }
  0xd9   :  { %vm123_vm5 = vcmp.eq.s32.totalorder %v105_v24, %v122_v32  ;;  %124 = vst [vmem:[#allocation2] sm:$0x1] %v122_v32 }
  0xda   :  { %v125_v33 = vsel %vm123_vm5, -inf, %v101_v17  ;;  %vm133_vm8 = vmxor %vm123_vm5, %vm275_vm7 }
  0xdb   :  { %v126_v34 = vrot.slane %v125_v33, 4 }
  0xdd   :  { %v127_v35 = vmax.f32 %v125_v33, %v126_v34 }
  0xdf   :  { %v128_v36 = vrot.slane %v127_v35, 2 }
  0xe1   :  { %v129_v37 = vmax.f32 %v127_v35, %v128_v36 }
  0xe3   :  { %v130_v38 = vrot.slane %v129_v37, 1 }
  0xe5   :  { %v131_v39 = vmax.f32 %v129_v37, %v130_v38 }
  0xe7   :  { %vm132_vm6 = vcmp.eq.f32.partialorder %v125_v33, %v131_v39  ;;  %v146_v40 = vsub.f32 %v131_v39, %v111_v25 }
  0xe8   :  { %vm134_vm9 = vmand %vm132_vm6, %vm133_vm8 }
  0xe9   :  { %v135_v41 = vsel %vm134_vm9, %v105_v24, 8  ;;  %v147_v42 = vmul.f32 1.442695, %v146_v40 }
  0xea   :  { %v136_v43 = vrot.slane %v135_v41, 4 }
  0xeb   :  { %219 = vpow2.f32 %v147_v42 }
  0xec   :  { %vm137_vm10 = vcmp.lt.s32.totalorder %v135_v41, %v136_v43 }
  0xed   :  { %v138_v44 = vsel %vm137_vm10, %v135_v41, %v136_v43 }
  0xee   :  { %v139_v45 = vrot.slane %v138_v44, 2 }
  0xf0   :  { %vm140_vm11 = vcmp.lt.s32.totalorder %v138_v44, %v139_v45 }
  0xf1   :  { %v220_v46 = vpop.eup %219  ;;  %v141_v47 = vsel %vm140_vm11, %v138_v44, %v139_v45 }
  0xf2   :  { %v149_v48 = vadd.f32 1.0, %v220_v46  ;;  %v142_v49 = vrot.slane %v141_v47, 1 }
  0xf4   :  { %221 = vrcp.f32 %v149_v48  ;;  %vm143_vm12 = vcmp.lt.s32.totalorder %v141_v47, %v142_v49  ;;  %v161_v54 = vand.u32 2147483648, %v149_v48  ;;  %v159_v56 = vand.u32 2147483647, %v149_v48 }
  0xf5   :  { %v144_v50 = vsel %vm143_vm12, %v141_v47, %v142_v49  ;;  %vm155_vm14 = vweird.f32 %v149_v48 }
  0xf6   :  { %145 = vst [vmem:[#allocation2 + $0x1] sm:$0x1] %v144_v50  ;;  %v162_v58 = vor.u32 1.1754944e-38, %v161_v54  ;;  %vm160_vm0 = vcmp.eq.f32.partialorder %v159_v56, 8.507059e+37 }
  0xf7   :  { %177 = dma.vmem_to_hbm [thread:$0]  %s173_s1, 32, %s175_s21, [#allocation3]  }
  0xfa   :  { %v222_v51 = vpop.eup %221 }
  0xfb   :  { %v151_v52 = vmul.f32 %v222_v51, %v149_v48  ;;  %vm156_vm13 = vweird.f32 %v222_v51 }
  0xfc   :  { %vm157_vm15 = vmor %vm155_vm14, %vm156_vm13 }
  0xfd   :  { %v152_v53 = vsub.f32 1.0, %v151_v52 }
  0xff   :  { %v153_v55 = vmul.f32 %v222_v51, %v152_v53 }
 0x101   :  { %v154_v57 = vadd.f32 %v222_v51, %v153_v55 }
 0x103   :  { %v158_v59 = vsel %vm157_vm15, %v222_v51, %v154_v57 }
 0x104   :  { %v163_v60 = vsel %vm160_vm0, %v162_v58, %v158_v59 }
 0x105   :  { %164 = vst [vmem:[#allocation4] sm:$0x1] %v163_v60  ;;  %v165_v61 = vmul.f32 %v220_v46, %v163_v60 }
 0x107   :  { %166 = vst [vmem:[#allocation4 + $0x1] sm:$0x1] %v165_v61 }
 0x108   :  { %188 = dma.vmem_to_hbm [thread:$0]  %s184_s22, 32, %s186_s25, [#allocation5]  }
 0x109   :  { %271 = dma.done.wait [#allocation3], 32  }
 0x10a   :  { %272 = vsyncadd [#allocation3], 4294967264 }
 0x10b   :  { %273 = dma.done.wait [#allocation5], 32  }
 0x10c   :  { %274 = vsyncadd [#allocation5], 4294967264 }
 0x10d   :  { %197 = vsyncpa [#allocation3], 1 }
 0x10e   :  { %198 = vsyncpa [#allocation5], 1 }

</bundles_post_ra>
